<compile_context>
chip_gen: v6e
topology: v6e:2x2x1
jax: 0.10.0
libtpu: 0.0.40
codegen_flags: <defaults>
</compile_context>

<pallas_src>
import math

import jax
import jax.numpy as jnp
from jax.experimental import pallas as pl
from jax.experimental.pallas import tpu as pltpu

# ---------------- model hyper-parameters (small, consistent with module) ----
B = 2            # batch
S = 8            # sequence length
D = 32           # input_size == hidden_size
H = 4            # num_heads
DH = D // H      # head_size
BS = B * S       # flattened (batch, seq) rows
LANE = 128       # TPU lane width; each packed weight sits on its own lane tile
LN_EPS = 1e-5
NEG_INF = -1e30


def _layernorm(y, gamma, beta):
    mu = jnp.mean(y, axis=-1, keepdims=True)
    var = jnp.mean((y - mu) ** 2, axis=-1, keepdims=True)
    return (y - mu) * jax.lax.rsqrt(var + LN_EPS) * gamma + beta


def block_kernel(x_ref, wqkv_ref, wo_ref, w1_ref, w2_ref,
                 vec128_ref, vec32_ref, mb_ref, o_ref):
    x = x_ref[...]                                  # (BS, D) f32
    vec128 = vec128_ref[...]                        # (8, LANE): bq,bk,bv + head masks
    vec32 = vec32_ref[...]                          # (8, D): bo,g1,be1,b1,b2,g2,be2
    mask_bias = mb_ref[...]                         # (BS, BS) block-diagonal 0 / -1e30

    # ----- fused QKV projection: one (BS,D) x (D,3*128) matmul ---------------
    # wq (pre-scaled by 1/sqrt(DH)), wk, wv each occupy their own 128-lane
    # tile inside wqkv, so the q/k/v splits below are full-tile lane slices.
    qkv = jnp.dot(x, wqkv_ref[...], preferred_element_type=jnp.float32)  # (BS, 3*LANE)
    q = qkv[:, 0:LANE] + vec128[0:1, :]             # lanes >= D stay exactly 0
    k = qkv[:, LANE:2 * LANE] + vec128[1:2, :]
    v = qkv[:, 2 * LANE:3 * LANE] + vec128[2:3, :]

    # ----- per-head attention via lane masks (no sub-tile lane slices) -------
    # scores_h = (q * mask_h) @ k^T  contracts only head-h lanes because all
    # other lanes of (q * mask_h) are zero.  Each head's context is masked
    # back onto its own lanes of a single (BS, LANE) slab so the output
    # projection is ONE matmul against the (LANE, D) padded wo.
    ctx = jnp.zeros((BS, LANE), jnp.float32)
    for h in range(H):                              # static unroll over heads
        m = vec128[3 + h:4 + h, :]                  # (1, LANE) head lane-mask
        s = jax.lax.dot_general(q * m, k, (((1,), (1,)), ((), ())),
                                preferred_element_type=jnp.float32)      # (BS, BS)
        s = s + mask_bias                           # keep batches independent
        s = s - jnp.max(s, axis=-1, keepdims=True)
        e = jnp.exp(s)
        p = e / jnp.sum(e, axis=-1, keepdims=True)  # exact divide (see header)
        ctx = ctx + jnp.dot(p, v * m, preferred_element_type=jnp.float32)

    joint = jnp.dot(ctx, wo_ref[...],
                    preferred_element_type=jnp.float32) + vec32[0:1, :]  # (BS, D)

    # ----- residual + LayerNorm ----------------------------------------------
    attended = _layernorm(joint + x, vec32[1:2, :], vec32[2:3, :])

    # ----- feed-forward -------------------------------------------------------
    hidden = jnp.maximum(
        jnp.dot(attended, w1_ref[...], preferred_element_type=jnp.float32)
        + vec32[3:4, :], 0.0)
    ff = jnp.dot(hidden, w2_ref[...], preferred_element_type=jnp.float32) + vec32[4:5, :]

    # second residual uses the ORIGINAL x, exactly as in the PyTorch module:
    #   return self.ff_norm(self.ff(attended) + x)
    o_ref[...] = _layernorm(ff + x, vec32[5:6, :], vec32[6:7, :]).astype(o_ref.dtype)


def pack_params(p):
    """One-time (host/init-time) packing of weights into tile-aligned slabs.

    Done OUTSIDE the per-call path so the forward is just reshape + kernel.
    """
    inv = jnp.float32(1.0 / math.sqrt(DH))

    # Fused QKV weight, each (D,D) weight on its own 128-lane tile.
    w_qkv = jnp.zeros((D, 3 * LANE), jnp.float32)
    w_qkv = w_qkv.at[:, 0:D].set(p["wq"] * inv)               # 1/sqrt(DH) folded in
    w_qkv = w_qkv.at[:, LANE:LANE + D].set(p["wk"])
    w_qkv = w_qkv.at[:, 2 * LANE:2 * LANE + D].set(p["wv"])

    # Output projection padded to K=128 so the (BS,128) context slab needs no slicing.
    w_o = jnp.zeros((LANE, D), jnp.float32).at[0:D, :].set(p["wo"])

    def pad128(row):                                          # (1, D) -> (1, LANE)
        return jnp.zeros((1, LANE), jnp.float32).at[:, 0:D].set(row)

    lane = jnp.arange(LANE)
    head_masks = jnp.stack(
        [jnp.where((lane // DH == h) & (lane < D), 1.0, 0.0) for h in range(H)],
        axis=0).astype(jnp.float32)                           # (H, LANE)

    vec128 = jnp.concatenate(
        [pad128(p["bq"] * inv), pad128(p["bk"]), pad128(p["bv"]),
         head_masks, jnp.zeros((1, LANE), jnp.float32)], axis=0)   # (8, LANE)

    vec32 = jnp.concatenate(
        [p["bo"], p["g1"], p["be1"], p["b1"], p["b2"], p["g2"], p["be2"],
         jnp.zeros((1, D), jnp.float32)], axis=0)                   # (8, D)

    # Block-diagonal score bias: attention stays within each batch element even
    # though all B*S rows are processed as one slab.
    row_b = jnp.arange(BS) // S
    mask_bias = jnp.where(row_b[:, None] == row_b[None, :],
                          jnp.float32(0.0), jnp.float32(NEG_INF))   # (BS, BS)

    return dict(w_qkv=w_qkv, w_o=w_o, w_1=p["w1"], w_2=p["w2"],
                vec128=vec128, vec32=vec32, mask_bias=mask_bias)


@jax.jit
def block_forward(x, packed):
    """x: (B, S, D) float32.  packed: output of pack_params (precomputed)."""
    x2 = x.reshape(BS, D)   # free row-major reshape, fused under jit

    out = pl.pallas_call(
        block_kernel,
        out_shape=jax.ShapeDtypeStruct((BS, D), jnp.float32),
        grid_spec=pltpu.PrefetchScalarGridSpec(
            num_scalar_prefetch=0,
            grid=(1,),                                        # single grid step
            in_specs=[
                pl.BlockSpec((BS, D), lambda i: (0, 0)),          # x slab
                pl.BlockSpec((D, 3 * LANE), lambda i: (0, 0)),    # fused QKV weight
                pl.BlockSpec((LANE, D), lambda i: (0, 0)),        # padded wo
                pl.BlockSpec((D, D), lambda i: (0, 0)),           # w1
                pl.BlockSpec((D, D), lambda i: (0, 0)),           # w2
                pl.BlockSpec((8, LANE), lambda i: (0, 0)),        # bq/bk/bv + head masks
                pl.BlockSpec((8, D), lambda i: (0, 0)),           # bo + LN/ff vectors
                pl.BlockSpec((BS, BS), lambda i: (0, 0)),         # score mask
            ],
            out_specs=pl.BlockSpec((BS, D), lambda i: (0, 0)),
        ),
        compiler_params=pltpu.CompilerParams(
            dimension_semantics=("arbitrary",)),
    )(x2, packed["w_qkv"], packed["w_o"], packed["w_1"], packed["w_2"],
      packed["vec128"], packed["vec32"], packed["mask_bias"])
    return out.reshape(B, S, D)


def make_params(key):
    """Deterministic synthetic weights, stored as (in_features, out_features)."""
    keys = jax.random.split(key, 12)
    scale = 0.1
    p = {}
    names_w = ["wq", "wk", "wv", "wo", "w1", "w2"]
    names_b = ["bq", "bk", "bv", "bo", "b1", "b2"]
    for i, (wn, bn) in enumerate(zip(names_w, names_b)):
        p[wn] = scale * jax.random.normal(keys[2 * i], (D, D), jnp.float32)
        p[bn] = scale * jax.random.normal(keys[2 * i + 1], (1, D), jnp.float32)
    # LayerNorm affine params (gamma=1, beta=0, like nn.LayerNorm default)
    p["g1"] = jnp.ones((1, D), jnp.float32)
    p["be1"] = jnp.zeros((1, D), jnp.float32)
    p["g2"] = jnp.ones((1, D), jnp.float32)
    p["be2"] = jnp.zeros((1, D), jnp.float32)
    return p


def block_reference(x, p):
    """Pure-JAX reference mirroring the PyTorch forward (eval mode)."""
    def lin(z, w, b):
        return z @ w + b[0]

    q = lin(x, p["wq"], p["bq"]).reshape(B, S, H, DH).transpose(0, 2, 1, 3)
    k = lin(x, p["wk"], p["bk"]).reshape(B, S, H, DH).transpose(0, 2, 1, 3)
    v = lin(x, p["wv"], p["bv"]).reshape(B, S, H, DH).transpose(0, 2, 1, 3)
    scores = jnp.einsum("bhqd,bhkd->bhqk", q, k) / jnp.sqrt(jnp.float32(DH))
    w = jax.nn.softmax(scores, axis=-1)
    ctx = jnp.einsum("bhqk,bhkd->bhqd", w, v).transpose(0, 2, 1, 3).reshape(B, S, D)
    joint = lin(ctx, p["wo"], p["bo"])

    def ln(y, g, bta):
        mu = y.mean(-1, keepdims=True)
        var = ((y - mu) ** 2).mean(-1, keepdims=True)
        return (y - mu) / jnp.sqrt(var + LN_EPS) * g[0] + bta[0]

    attended = ln(joint + x, p["g1"], p["be1"])
    hidden = jax.nn.relu(lin(attended, p["w1"], p["b1"]))
    ff = lin(hidden, p["w2"], p["b2"])
    return ln(ff + x, p["g2"], p["be2"])


if __name__ == "__main__":
    key = jax.random.PRNGKey(0)
    k_x, k_p = jax.random.split(key)
    x = jax.random.normal(k_x, (B, S, D), jnp.float32)
    params = make_params(k_p)

    # Packing is hoisted out of the per-call path (done once here).
    packed = pack_params(params)
    packed = jax.tree_util.tree_map(jax.block_until_ready, packed)

    out = block_forward(x, packed)
    out = jax.block_until_ready(out)

    ref = block_reference(x, params)
    assert out.shape == (B, S, D)
    # Approx reciprocal removed (exact softmax divide); remaining difference is
    # only MXU-vs-XLA matmul rounding.
    assert jnp.allclose(out, ref, atol=1e-3, rtol=1e-3), (
        float(jnp.max(jnp.abs(out - ref))))

    print("KERNEL_OK")
</pallas_src>

<mosaic_0001>
module attributes {stable_mosaic.version = 11 : i64} {
  func.func @block_kernel(%arg0: i32, %arg1: memref<16x32xf32, #tpu.memory_space<vmem>>, %arg2: memref<32x384xf32, #tpu.memory_space<vmem>>, %arg3: memref<128x32xf32, #tpu.memory_space<vmem>>, %arg4: memref<32x32xf32, #tpu.memory_space<vmem>>, %arg5: memref<32x32xf32, #tpu.memory_space<vmem>>, %arg6: memref<8x128xf32, #tpu.memory_space<vmem>>, %arg7: memref<8x32xf32, #tpu.memory_space<vmem>>, %arg8: memref<16x16xf32, #tpu.memory_space<vmem>>, %arg9: memref<16x32xf32, #tpu.memory_space<vmem>>) attributes {dimension_semantics = [#tpu.dimension_semantics<arbitrary>], iteration_bounds = array<i64: 1>, scalar_prefetch = 0 : i64, scratch_operands = 0 : i64, tpu.core_type = #tpu.core_type<tc>, window_params = [{pipeline_mode = #tpu.pipeline_mode<synchronous>, transform_indices = @transform_0, window_bounds = array<i64: 16, 32>}, {pipeline_mode = #tpu.pipeline_mode<synchronous>, transform_indices = @transform_1, window_bounds = array<i64: 32, 384>}, {pipeline_mode = #tpu.pipeline_mode<synchronous>, transform_indices = @transform_2, window_bounds = array<i64: 128, 32>}, {pipeline_mode = #tpu.pipeline_mode<synchronous>, transform_indices = @transform_3, window_bounds = array<i64: 32, 32>}, {pipeline_mode = #tpu.pipeline_mode<synchronous>, transform_indices = @transform_4, window_bounds = array<i64: 32, 32>}, {pipeline_mode = #tpu.pipeline_mode<synchronous>, transform_indices = @transform_5, window_bounds = array<i64: 8, 128>}, {pipeline_mode = #tpu.pipeline_mode<synchronous>, transform_indices = @transform_6, window_bounds = array<i64: 8, 32>}, {pipeline_mode = #tpu.pipeline_mode<synchronous>, transform_indices = @transform_7, window_bounds = array<i64: 16, 16>}, {pipeline_mode = #tpu.pipeline_mode<synchronous>, transform_indices = @transform_8, window_bounds = array<i64: 16, 32>}]} {
    %c0 = arith.constant 0 : index
    %c0_0 = arith.constant 0 : index
    %0 = vector.load %arg1[%c0, %c0_0] : memref<16x32xf32, #tpu.memory_space<vmem>>, vector<16x32xf32>
    %c0_1 = arith.constant 0 : index
    %c0_2 = arith.constant 0 : index
    %1 = vector.load %arg6[%c0_1, %c0_2] : memref<8x128xf32, #tpu.memory_space<vmem>>, vector<8x128xf32>
    %c0_3 = arith.constant 0 : index
    %c0_4 = arith.constant 0 : index
    %2 = vector.load %arg7[%c0_3, %c0_4] : memref<8x32xf32, #tpu.memory_space<vmem>>, vector<8x32xf32>
    %c0_5 = arith.constant 0 : index
    %c0_6 = arith.constant 0 : index
    %3 = vector.load %arg8[%c0_5, %c0_6] : memref<16x16xf32, #tpu.memory_space<vmem>>, vector<16x16xf32>
    %c0_7 = arith.constant 0 : index
    %c0_8 = arith.constant 0 : index
    %4 = vector.load %arg2[%c0_7, %c0_8] : memref<32x384xf32, #tpu.memory_space<vmem>>, vector<32x384xf32>
    %cst = arith.constant dense<0.000000e+00> : vector<16x384xf32>
    %5 = tpu.matmul %0, %4, %cst {dimension_numbers = #tpu.dot_dimension_numbers<[1], [0], [0], [1], [0, 0, 1, 1], [], []>} : vector<16x32xf32>, vector<32x384xf32>, vector<16x384xf32> -> vector<16x384xf32>
    %6 = vector.extract_strided_slice %5 {offsets = [0, 0], sizes = [16, 128], strides = [1, 1]} : vector<16x384xf32> to vector<16x128xf32>
    %7 = vector.extract_strided_slice %1 {offsets = [0, 0], sizes = [1, 128], strides = [1, 1]} : vector<8x128xf32> to vector<1x128xf32>
    %8 = vector.broadcast %7 : vector<1x128xf32> to vector<16x128xf32>
    %9 = arith.addf %6, %8 : vector<16x128xf32>
    %10 = vector.extract_strided_slice %5 {offsets = [0, 128], sizes = [16, 128], strides = [1, 1]} : vector<16x384xf32> to vector<16x128xf32>
    %11 = vector.extract_strided_slice %1 {offsets = [1, 0], sizes = [1, 128], strides = [1, 1]} : vector<8x128xf32> to vector<1x128xf32>
    %12 = vector.broadcast %11 : vector<1x128xf32> to vector<16x128xf32>
    %13 = arith.addf %10, %12 : vector<16x128xf32>
    %14 = vector.extract_strided_slice %5 {offsets = [0, 256], sizes = [16, 128], strides = [1, 1]} : vector<16x384xf32> to vector<16x128xf32>
    %15 = vector.extract_strided_slice %1 {offsets = [2, 0], sizes = [1, 128], strides = [1, 1]} : vector<8x128xf32> to vector<1x128xf32>
    %16 = vector.broadcast %15 : vector<1x128xf32> to vector<16x128xf32>
    %17 = arith.addf %14, %16 : vector<16x128xf32>
    %cst_9 = arith.constant 0.000000e+00 : f32
    %18 = vector.broadcast %cst_9 : f32 to vector<16x128xf32>
    %19 = vector.extract_strided_slice %1 {offsets = [3, 0], sizes = [1, 128], strides = [1, 1]} : vector<8x128xf32> to vector<1x128xf32>
    %20 = vector.broadcast %19 : vector<1x128xf32> to vector<16x128xf32>
    %21 = arith.mulf %9, %20 : vector<16x128xf32>
    %cst_10 = arith.constant dense<0.000000e+00> : vector<16x16xf32>
    %22 = tpu.matmul %21, %13, %cst_10 {dimension_numbers = #tpu.dot_dimension_numbers<[1], [1], [0], [0], [0, 0, 1, 0], [], []>} : vector<16x128xf32>, vector<16x128xf32>, vector<16x16xf32> -> vector<16x16xf32>
    %23 = arith.addf %22, %3 : vector<16x16xf32>
    %cst_11 = arith.constant dense<0xFF800000> : vector<16xf32>
    %24 = vector.multi_reduction <maximumf>, %23, %cst_11 [1] : vector<16x16xf32> to vector<16xf32>
    %25 = vector.shape_cast %24 : vector<16xf32> to vector<16x1xf32>
    %26 = vector.broadcast %25 : vector<16x1xf32> to vector<16x16xf32>
    %27 = arith.subf %23, %26 : vector<16x16xf32>
    %28 = math.exp %27 : vector<16x16xf32>
    %cst_12 = arith.constant dense<0.000000e+00> : vector<16xf32>
    %29 = vector.multi_reduction <add>, %28, %cst_12 [1] : vector<16x16xf32> to vector<16xf32>
    %30 = vector.shape_cast %29 : vector<16xf32> to vector<16x1xf32>
    %31 = vector.broadcast %30 : vector<16x1xf32> to vector<16x16xf32>
    %32 = arith.divf %28, %31 : vector<16x16xf32>
    %33 = vector.broadcast %19 : vector<1x128xf32> to vector<16x128xf32>
    %34 = arith.mulf %17, %33 : vector<16x128xf32>
    %cst_13 = arith.constant dense<0.000000e+00> : vector<16x128xf32>
    %35 = tpu.matmul %32, %34, %cst_13 {dimension_numbers = #tpu.dot_dimension_numbers<[1], [0], [0], [1], [0, 0, 1, 1], [], []>} : vector<16x16xf32>, vector<16x128xf32>, vector<16x128xf32> -> vector<16x128xf32>
    %36 = arith.addf %18, %35 : vector<16x128xf32>
    %37 = vector.extract_strided_slice %1 {offsets = [4, 0], sizes = [1, 128], strides = [1, 1]} : vector<8x128xf32> to vector<1x128xf32>
    %38 = vector.broadcast %37 : vector<1x128xf32> to vector<16x128xf32>
    %39 = arith.mulf %9, %38 : vector<16x128xf32>
    %cst_14 = arith.constant dense<0.000000e+00> : vector<16x16xf32>
    %40 = tpu.matmul %39, %13, %cst_14 {dimension_numbers = #tpu.dot_dimension_numbers<[1], [1], [0], [0], [0, 0, 1, 0], [], []>} : vector<16x128xf32>, vector<16x128xf32>, vector<16x16xf32> -> vector<16x16xf32>
    %41 = arith.addf %40, %3 : vector<16x16xf32>
    %cst_15 = arith.constant dense<0xFF800000> : vector<16xf32>
    %42 = vector.multi_reduction <maximumf>, %41, %cst_15 [1] : vector<16x16xf32> to vector<16xf32>
    %43 = vector.shape_cast %42 : vector<16xf32> to vector<16x1xf32>
    %44 = vector.broadcast %43 : vector<16x1xf32> to vector<16x16xf32>
    %45 = arith.subf %41, %44 : vector<16x16xf32>
    %46 = math.exp %45 : vector<16x16xf32>
    %cst_16 = arith.constant dense<0.000000e+00> : vector<16xf32>
    %47 = vector.multi_reduction <add>, %46, %cst_16 [1] : vector<16x16xf32> to vector<16xf32>
    %48 = vector.shape_cast %47 : vector<16xf32> to vector<16x1xf32>
    %49 = vector.broadcast %48 : vector<16x1xf32> to vector<16x16xf32>
    %50 = arith.divf %46, %49 : vector<16x16xf32>
    %51 = vector.broadcast %37 : vector<1x128xf32> to vector<16x128xf32>
    %52 = arith.mulf %17, %51 : vector<16x128xf32>
    %cst_17 = arith.constant dense<0.000000e+00> : vector<16x128xf32>
    %53 = tpu.matmul %50, %52, %cst_17 {dimension_numbers = #tpu.dot_dimension_numbers<[1], [0], [0], [1], [0, 0, 1, 1], [], []>} : vector<16x16xf32>, vector<16x128xf32>, vector<16x128xf32> -> vector<16x128xf32>
    %54 = arith.addf %36, %53 : vector<16x128xf32>
    %55 = vector.extract_strided_slice %1 {offsets = [5, 0], sizes = [1, 128], strides = [1, 1]} : vector<8x128xf32> to vector<1x128xf32>
    %56 = vector.broadcast %55 : vector<1x128xf32> to vector<16x128xf32>
    %57 = arith.mulf %9, %56 : vector<16x128xf32>
    %cst_18 = arith.constant dense<0.000000e+00> : vector<16x16xf32>
    %58 = tpu.matmul %57, %13, %cst_18 {dimension_numbers = #tpu.dot_dimension_numbers<[1], [1], [0], [0], [0, 0, 1, 0], [], []>} : vector<16x128xf32>, vector<16x128xf32>, vector<16x16xf32> -> vector<16x16xf32>
    %59 = arith.addf %58, %3 : vector<16x16xf32>
    %cst_19 = arith.constant dense<0xFF800000> : vector<16xf32>
    %60 = vector.multi_reduction <maximumf>, %59, %cst_19 [1] : vector<16x16xf32> to vector<16xf32>
    %61 = vector.shape_cast %60 : vector<16xf32> to vector<16x1xf32>
    %62 = vector.broadcast %61 : vector<16x1xf32> to vector<16x16xf32>
    %63 = arith.subf %59, %62 : vector<16x16xf32>
    %64 = math.exp %63 : vector<16x16xf32>
    %cst_20 = arith.constant dense<0.000000e+00> : vector<16xf32>
    %65 = vector.multi_reduction <add>, %64, %cst_20 [1] : vector<16x16xf32> to vector<16xf32>
    %66 = vector.shape_cast %65 : vector<16xf32> to vector<16x1xf32>
    %67 = vector.broadcast %66 : vector<16x1xf32> to vector<16x16xf32>
    %68 = arith.divf %64, %67 : vector<16x16xf32>
    %69 = vector.broadcast %55 : vector<1x128xf32> to vector<16x128xf32>
    %70 = arith.mulf %17, %69 : vector<16x128xf32>
    %cst_21 = arith.constant dense<0.000000e+00> : vector<16x128xf32>
    %71 = tpu.matmul %68, %70, %cst_21 {dimension_numbers = #tpu.dot_dimension_numbers<[1], [0], [0], [1], [0, 0, 1, 1], [], []>} : vector<16x16xf32>, vector<16x128xf32>, vector<16x128xf32> -> vector<16x128xf32>
    %72 = arith.addf %54, %71 : vector<16x128xf32>
    %73 = vector.extract_strided_slice %1 {offsets = [6, 0], sizes = [1, 128], strides = [1, 1]} : vector<8x128xf32> to vector<1x128xf32>
    %74 = vector.broadcast %73 : vector<1x128xf32> to vector<16x128xf32>
    %75 = arith.mulf %9, %74 : vector<16x128xf32>
    %cst_22 = arith.constant dense<0.000000e+00> : vector<16x16xf32>
    %76 = tpu.matmul %75, %13, %cst_22 {dimension_numbers = #tpu.dot_dimension_numbers<[1], [1], [0], [0], [0, 0, 1, 0], [], []>} : vector<16x128xf32>, vector<16x128xf32>, vector<16x16xf32> -> vector<16x16xf32>
    %77 = arith.addf %76, %3 : vector<16x16xf32>
    %cst_23 = arith.constant dense<0xFF800000> : vector<16xf32>
    %78 = vector.multi_reduction <maximumf>, %77, %cst_23 [1] : vector<16x16xf32> to vector<16xf32>
    %79 = vector.shape_cast %78 : vector<16xf32> to vector<16x1xf32>
    %80 = vector.broadcast %79 : vector<16x1xf32> to vector<16x16xf32>
    %81 = arith.subf %77, %80 : vector<16x16xf32>
    %82 = math.exp %81 : vector<16x16xf32>
    %cst_24 = arith.constant dense<0.000000e+00> : vector<16xf32>
    %83 = vector.multi_reduction <add>, %82, %cst_24 [1] : vector<16x16xf32> to vector<16xf32>
    %84 = vector.shape_cast %83 : vector<16xf32> to vector<16x1xf32>
    %85 = vector.broadcast %84 : vector<16x1xf32> to vector<16x16xf32>
    %86 = arith.divf %82, %85 : vector<16x16xf32>
    %87 = vector.broadcast %73 : vector<1x128xf32> to vector<16x128xf32>
    %88 = arith.mulf %17, %87 : vector<16x128xf32>
    %cst_25 = arith.constant dense<0.000000e+00> : vector<16x128xf32>
    %89 = tpu.matmul %86, %88, %cst_25 {dimension_numbers = #tpu.dot_dimension_numbers<[1], [0], [0], [1], [0, 0, 1, 1], [], []>} : vector<16x16xf32>, vector<16x128xf32>, vector<16x128xf32> -> vector<16x128xf32>
    %90 = arith.addf %72, %89 : vector<16x128xf32>
    %c0_26 = arith.constant 0 : index
    %c0_27 = arith.constant 0 : index
    %91 = vector.load %arg3[%c0_26, %c0_27] : memref<128x32xf32, #tpu.memory_space<vmem>>, vector<128x32xf32>
    %cst_28 = arith.constant dense<0.000000e+00> : vector<16x32xf32>
    %92 = tpu.matmul %90, %91, %cst_28 {dimension_numbers = #tpu.dot_dimension_numbers<[1], [0], [0], [1], [0, 0, 1, 1], [], []>} : vector<16x128xf32>, vector<128x32xf32>, vector<16x32xf32> -> vector<16x32xf32>
    %93 = vector.extract_strided_slice %2 {offsets = [0, 0], sizes = [1, 32], strides = [1, 1]} : vector<8x32xf32> to vector<1x32xf32>
    %94 = vector.broadcast %93 : vector<1x32xf32> to vector<16x32xf32>
    %95 = arith.addf %92, %94 : vector<16x32xf32>
    %96 = arith.addf %95, %0 : vector<16x32xf32>
    %97 = vector.extract_strided_slice %2 {offsets = [1, 0], sizes = [1, 32], strides = [1, 1]} : vector<8x32xf32> to vector<1x32xf32>
    %98 = vector.extract_strided_slice %2 {offsets = [2, 0], sizes = [1, 32], strides = [1, 1]} : vector<8x32xf32> to vector<1x32xf32>
    %cst_29 = arith.constant dense<0.000000e+00> : vector<16xf32>
    %99 = vector.multi_reduction <add>, %96, %cst_29 [1] : vector<16x32xf32> to vector<16xf32>
    %100 = vector.shape_cast %99 : vector<16xf32> to vector<16x1xf32>
    %cst_30 = arith.constant 3.200000e+01 : f32
    %101 = vector.broadcast %cst_30 : f32 to vector<16x1xf32>
    %102 = arith.divf %100, %101 : vector<16x1xf32>
    %103 = vector.broadcast %102 : vector<16x1xf32> to vector<16x32xf32>
    %104 = arith.subf %96, %103 : vector<16x32xf32>
    %105 = arith.mulf %104, %104 : vector<16x32xf32>
    %cst_31 = arith.constant dense<0.000000e+00> : vector<16xf32>
    %106 = vector.multi_reduction <add>, %105, %cst_31 [1] : vector<16x32xf32> to vector<16xf32>
    %107 = vector.shape_cast %106 : vector<16xf32> to vector<16x1xf32>
    %cst_32 = arith.constant 3.200000e+01 : f32
    %108 = vector.broadcast %cst_32 : f32 to vector<16x1xf32>
    %109 = arith.divf %107, %108 : vector<16x1xf32>
    %110 = vector.broadcast %102 : vector<16x1xf32> to vector<16x32xf32>
    %111 = arith.subf %96, %110 : vector<16x32xf32>
    %cst_33 = arith.constant 9.99999974E-6 : f32
    %112 = vector.broadcast %cst_33 : f32 to vector<16x1xf32>
    %113 = arith.addf %109, %112 : vector<16x1xf32>
    %114 = math.rsqrt %113 : vector<16x1xf32>
    %115 = vector.broadcast %114 : vector<16x1xf32> to vector<16x32xf32>
    %116 = arith.mulf %111, %115 : vector<16x32xf32>
    %117 = vector.broadcast %97 : vector<1x32xf32> to vector<16x32xf32>
    %118 = arith.mulf %116, %117 : vector<16x32xf32>
    %119 = vector.broadcast %98 : vector<1x32xf32> to vector<16x32xf32>
    %120 = arith.addf %118, %119 : vector<16x32xf32>
    %c0_34 = arith.constant 0 : index
    %c0_35 = arith.constant 0 : index
    %121 = vector.load %arg4[%c0_34, %c0_35] : memref<32x32xf32, #tpu.memory_space<vmem>>, vector<32x32xf32>
    %cst_36 = arith.constant dense<0.000000e+00> : vector<16x32xf32>
    %122 = tpu.matmul %120, %121, %cst_36 {dimension_numbers = #tpu.dot_dimension_numbers<[1], [0], [0], [1], [0, 0, 1, 1], [], []>} : vector<16x32xf32>, vector<32x32xf32>, vector<16x32xf32> -> vector<16x32xf32>
    %123 = vector.extract_strided_slice %2 {offsets = [3, 0], sizes = [1, 32], strides = [1, 1]} : vector<8x32xf32> to vector<1x32xf32>
    %124 = vector.broadcast %123 : vector<1x32xf32> to vector<16x32xf32>
    %125 = arith.addf %122, %124 : vector<16x32xf32>
    %cst_37 = arith.constant 0.000000e+00 : f32
    %126 = vector.broadcast %cst_37 : f32 to vector<16x32xf32>
    %127 = arith.maximumf %125, %126 : vector<16x32xf32>
    %c0_38 = arith.constant 0 : index
    %c0_39 = arith.constant 0 : index
    %128 = vector.load %arg5[%c0_38, %c0_39] : memref<32x32xf32, #tpu.memory_space<vmem>>, vector<32x32xf32>
    %cst_40 = arith.constant dense<0.000000e+00> : vector<16x32xf32>
    %129 = tpu.matmul %127, %128, %cst_40 {dimension_numbers = #tpu.dot_dimension_numbers<[1], [0], [0], [1], [0, 0, 1, 1], [], []>} : vector<16x32xf32>, vector<32x32xf32>, vector<16x32xf32> -> vector<16x32xf32>
    %130 = vector.extract_strided_slice %2 {offsets = [4, 0], sizes = [1, 32], strides = [1, 1]} : vector<8x32xf32> to vector<1x32xf32>
    %131 = vector.broadcast %130 : vector<1x32xf32> to vector<16x32xf32>
    %132 = arith.addf %129, %131 : vector<16x32xf32>
    %133 = arith.addf %132, %0 : vector<16x32xf32>
    %134 = vector.extract_strided_slice %2 {offsets = [5, 0], sizes = [1, 32], strides = [1, 1]} : vector<8x32xf32> to vector<1x32xf32>
    %135 = vector.extract_strided_slice %2 {offsets = [6, 0], sizes = [1, 32], strides = [1, 1]} : vector<8x32xf32> to vector<1x32xf32>
    %cst_41 = arith.constant dense<0.000000e+00> : vector<16xf32>
    %136 = vector.multi_reduction <add>, %133, %cst_41 [1] : vector<16x32xf32> to vector<16xf32>
    %137 = vector.shape_cast %136 : vector<16xf32> to vector<16x1xf32>
    %cst_42 = arith.constant 3.200000e+01 : f32
    %138 = vector.broadcast %cst_42 : f32 to vector<16x1xf32>
    %139 = arith.divf %137, %138 : vector<16x1xf32>
    %140 = vector.broadcast %139 : vector<16x1xf32> to vector<16x32xf32>
    %141 = arith.subf %133, %140 : vector<16x32xf32>
    %142 = arith.mulf %141, %141 : vector<16x32xf32>
    %cst_43 = arith.constant dense<0.000000e+00> : vector<16xf32>
    %143 = vector.multi_reduction <add>, %142, %cst_43 [1] : vector<16x32xf32> to vector<16xf32>
    %144 = vector.shape_cast %143 : vector<16xf32> to vector<16x1xf32>
    %cst_44 = arith.constant 3.200000e+01 : f32
    %145 = vector.broadcast %cst_44 : f32 to vector<16x1xf32>
    %146 = arith.divf %144, %145 : vector<16x1xf32>
    %147 = vector.broadcast %139 : vector<16x1xf32> to vector<16x32xf32>
    %148 = arith.subf %133, %147 : vector<16x32xf32>
    %cst_45 = arith.constant 9.99999974E-6 : f32
    %149 = vector.broadcast %cst_45 : f32 to vector<16x1xf32>
    %150 = arith.addf %146, %149 : vector<16x1xf32>
    %151 = math.rsqrt %150 : vector<16x1xf32>
    %152 = vector.broadcast %151 : vector<16x1xf32> to vector<16x32xf32>
    %153 = arith.mulf %148, %152 : vector<16x32xf32>
    %154 = vector.broadcast %134 : vector<1x32xf32> to vector<16x32xf32>
    %155 = arith.mulf %153, %154 : vector<16x32xf32>
    %156 = vector.broadcast %135 : vector<1x32xf32> to vector<16x32xf32>
    %157 = arith.addf %155, %156 : vector<16x32xf32>
    %c0_46 = arith.constant 0 : index
    %c0_47 = arith.constant 0 : index
    %158 = vector.load %arg9[%c0_46, %c0_47] : memref<16x32xf32, #tpu.memory_space<vmem>>, vector<16x32xf32>
    tpu.vector_store %arg9[%c0_46, %c0_47], %157 {strides = array<i32>} : memref<16x32xf32, #tpu.memory_space<vmem>>, vector<16x32xf32>,
    return
  }
  func.func @transform_0(%arg0: i32) -> (i32, i32) {
    %c0_i32 = arith.constant 0 : i32
    %c0_i32_0 = arith.constant 0 : i32
    %c0_i32_1 = arith.constant 0 : i32
    return %c0_i32, %c0_i32_0 : i32, i32
  }
  func.func @transform_1(%arg0: i32) -> (i32, i32) {
    %c0_i32 = arith.constant 0 : i32
    %c0_i32_0 = arith.constant 0 : i32
    %c0_i32_1 = arith.constant 0 : i32
    return %c0_i32, %c0_i32_0 : i32, i32
  }
  func.func @transform_2(%arg0: i32) -> (i32, i32) {
    %c0_i32 = arith.constant 0 : i32
    %c0_i32_0 = arith.constant 0 : i32
    %c0_i32_1 = arith.constant 0 : i32
    return %c0_i32, %c0_i32_0 : i32, i32
  }
  func.func @transform_3(%arg0: i32) -> (i32, i32) {
    %c0_i32 = arith.constant 0 : i32
    %c0_i32_0 = arith.constant 0 : i32
    %c0_i32_1 = arith.constant 0 : i32
    return %c0_i32, %c0_i32_0 : i32, i32
  }
  func.func @transform_4(%arg0: i32) -> (i32, i32) {
    %c0_i32 = arith.constant 0 : i32
    %c0_i32_0 = arith.constant 0 : i32
    %c0_i32_1 = arith.constant 0 : i32
    return %c0_i32, %c0_i32_0 : i32, i32
  }
  func.func @transform_5(%arg0: i32) -> (i32, i32) {
    %c0_i32 = arith.constant 0 : i32
    %c0_i32_0 = arith.constant 0 : i32
    %c0_i32_1 = arith.constant 0 : i32
    return %c0_i32, %c0_i32_0 : i32, i32
  }
  func.func @transform_6(%arg0: i32) -> (i32, i32) {
    %c0_i32 = arith.constant 0 : i32
    %c0_i32_0 = arith.constant 0 : i32
    %c0_i32_1 = arith.constant 0 : i32
    return %c0_i32, %c0_i32_0 : i32, i32
  }
  func.func @transform_7(%arg0: i32) -> (i32, i32) {
    %c0_i32 = arith.constant 0 : i32
    %c0_i32_0 = arith.constant 0 : i32
    %c0_i32_1 = arith.constant 0 : i32
    return %c0_i32, %c0_i32_0 : i32, i32
  }
  func.func @transform_8(%arg0: i32) -> (i32, i32) {
    %c0_i32 = arith.constant 0 : i32
    %c0_i32_0 = arith.constant 0 : i32
    %c0_i32_1 = arith.constant 0 : i32
    return %c0_i32, %c0_i32_0 : i32, i32
  }
}

</mosaic_0001>

<bundles_post_ra>
// kernel: block_forward.1
= control target key start
LH: loop header
LB: loop body
LE: loop exit
PB: predicated region body
PF: predicated region fallthrough
CT: control target
= control target key end

     0   :  { %13 = vsyncpa [#allocation3], 0  ;;  %s2110_s0 = inlined_call_operand.hbm [shape: f32[16,32], index: 0, kind: input, shape index: {}]   ;;  %s2111_s1 = inlined_call_operand.vmem [shape: f32[32,384], index: 1, kind: input, shape index: {}]   ;;  %s2112_s2 = inlined_call_operand.vmem [shape: f32[128,32], index: 2, kind: input, shape index: {}]   ;;  %s2113_s3 = inlined_call_operand.vmem [shape: f32[32,32], index: 3, kind: input, shape index: {}]   ;;  %s2114_s4 = inlined_call_operand.vmem [shape: f32[32,32], index: 4, kind: input, shape index: {}]   ;;  %s2115_s5 = inlined_call_operand.vmem [shape: f32[8,128], index: 5, kind: input, shape index: {}]   ;;  %s2116_s6 = inlined_call_operand.hbm [shape: f32[8,32], index: 6, kind: input, shape index: {}]   ;;  %s2117_s7 = inlined_call_operand.hbm [shape: f32[16,16], index: 7, kind: input, shape index: {}]   ;;  %s2118_s8 = inlined_call_operand.hbm [shape: f32[16,32], index: 8, kind: output, shape index: {}]  }
   0x1   :  { %14 = vsyncpa [#allocation6], 0 }
   0x2   :  { %15 = vsyncpa [#allocation4], 0  ;;  %s1730_s27 = smov [#allocation5]   ;;  %s1731_s29 = smov [#allocation2]  }
   0x3   :  { %s44_s28 = sshll.u32 %s1730_s27, 4  ;;  %s21_s30 = sshll.u32 %s1731_s29, 4  ;;  %s45_s28 = int_to_ptr.vmem [resolvable:$true] %s44_s28  ;;  %s22_s30 = int_to_ptr.vmem [resolvable:$true] %s21_s30 }
   0x4   :  { %s1652_s9 = scalar_lea.vmem %s45_s28, 128  ;;  %p1657_p1 = scmp.lt.s32.totalorder %s45_s28, %s45_s28 }
   0x5   :  { %p1653_p0 = scmp.ne.s32.totalorder %s45_s28, %s1652_s9  ;;  %p1658_p2 = scmp.lt.s32.totalorder %s1652_s9, %s1652_s9 }
   0x7   :  { %p1659_p3 = por %p1658_p2, %p1657_p1 }
   0x9   :  { %p1660_p4 = pnand %p1659_p3, %p1653_p0 }
   0xb   :  { %1663 = shalt.err (!%p1660_p4)
}
   0xc   :  { %47 = dma.hbm_to_vmem [thread:$0]  %s2116_s6, 128, %s45_s28, [#allocation6]  }
   0xd   :  { %s1672_s12 = scalar_lea.vmem %s22_s30, 256  ;;  %p1677_p6 = scmp.lt.s32.totalorder %s22_s30, %s22_s30 }
   0xe   :  { %p1673_p5 = scmp.ne.s32.totalorder %s22_s30, %s1672_s12  ;;  %p1678_p7 = scmp.lt.s32.totalorder %s1672_s12, %s1672_s12 }
  0x10   :  { %p1679_p8 = por %p1678_p7, %p1677_p6 }
  0x12   :  { %p1680_p9 = pnand %p1679_p8, %p1673_p5 }
  0x14   :  { %1683 = shalt.err (!%p1680_p9)
}
  0x15   :  { %s1732_s13 = smov 128   ;;  %s1733_s14 = smov 8  }
  0x16   :  { %27 = dma.hbm_to_vmem [thread:$0]  %s2110_s0, 256, %s22_s30, [#allocation3], %s1732_s13, %s1732_s13, %s1733_s14  }
  0x17   :  { %s1734_s17 = smov [#allocation7]  }
  0x18   :  { %s53_s18 = sshll.u32 %s1734_s17, 4  ;;  %s54_s18 = int_to_ptr.vmem [resolvable:$true] %s53_s18 }
  0x19   :  { %s1692_s6 = scalar_lea.vmem %s54_s18, 256  ;;  %p1697_p11 = scmp.lt.s32.totalorder %s54_s18, %s54_s18 }
  0x1a   :  { %p1693_p10 = scmp.ne.s32.totalorder %s54_s18, %s1692_s6  ;;  %p1698_p12 = scmp.lt.s32.totalorder %s1692_s6, %s1692_s6 }
  0x1c   :  { %p1699_p13 = por %p1698_p12, %p1697_p11 }
  0x1e   :  { %p1700_p0 = pnand %p1699_p13, %p1693_p10 }
  0x20   :  { %1703 = shalt.err (!%p1700_p0)
}
  0x21   :  { %59 = dma.hbm_to_vmem [thread:$0]  %s2117_s7, 256, %s54_s18, [#allocation6], %s1732_s13, %s1732_s13, %s1733_s14  }
  0x22   :  { %1724 = dma.done.wait [#allocation3], 256  }
  0x23   :  { %1725 = vsyncadd [#allocation3], 4294967040 }
  0x24   :  { %1726 = dma.done.wait [#allocation6], 384  }
  0x25   :  { %1727 = vsyncadd [#allocation6], 4294966912  ;;  %v1735_v0 = vmov 0.0   ;;  %v85_v1 = vld [vmem:[%s2111_s1 + $0x50] sm:$0xff]  ;;  %v84_v2 = vld [vmem:[%s2111_s1 + $0x48] sm:$0xff]  ;;  %vm87_vm0 = vcmask 261120   ;;  %v246_v15 = vlaneseq }
  0x26   :  { %158 = vmatprep.mubr.f32.mxu1 %v1735_v0  ;;  %v82_v3 = vld [vmem:[%s2111_s1 + $0x38] sm:$0xff]  ;;  %118 = vmatprep.subr.mxu1 %v85_v1  ;;  %v81_v4 = vld [vmem:[%s2111_s1 + $0x30] sm:$0xff]  ;;  %v79_v5 = vld [vmem:[%s2111_s1 + $0x20] sm:$0xff]  ;;  %vm345_vm1 = vcmask 130048  }
  0x27   :  { %119 = vmatpush1.msra.mxu1 %v84_v2  ;;  %v78_v6 = vld [vmem:[%s2111_s1 + $0x18] sm:$0xff]  ;;  %v76_v7 = vld [vmem:[%s2111_s1 + $0x8] sm:$0xff]  ;;  %v75_v8 = vld [vmem:[%s2111_s1] sm:$0xff]  ;;  %v1845_v16 = vshrl.u32 %v246_v15, 7 }
  0x28   :  { %120 = vmatprep.subr.mxu1 %v82_v3  ;;  %v1821_v9 = vld [vmem:[#allocation2] sm:$0xff]  ;;  %v86_v10 = vld [vmem:[%s2111_s1 + $0x58] sm:$0xff]  ;;  %v1831_v12 = vld [vmem:[#allocation2 + $0x8] sm:$0xff] }
  0x29   :  { %121 = vmatpush1.msra.mxu1 %v81_v4  ;;  %v83_v11 = vld [vmem:[%s2111_s1 + $0x40] sm:$0xff]  ;;  %v80_v13 = vld [vmem:[%s2111_s1 + $0x28] sm:$0xff]  ;;  %v77_v14 = vld [vmem:[%s2111_s1 + $0x10] sm:$0xff]  ;;  %v248_v17 = vsub.s32 0, %v1845_v16  ;;  %v266_v19 = vsub.s32 3, %v1845_v16  ;;  %v372_v20 = vsub.s32 4, %v1845_v16 }
  0x2a   :  { %122 = vmatprep.subr.mxu1 %v79_v5  ;;  %v1851_v18 = vld [vmem:[%s2115_s5] sm:$0xff]  ;;  %v254_v26 = vsub.s32 1, %v1845_v16  ;;  %v260_v27 = vsub.s32 2, %v1845_v16  ;;  %v639_v41 = vsub.s32 5, %v1845_v16  ;;  %v1912_v52 = vld [vmem:[#allocation7] sm:$0xff] }
  0x2b   :  { %123 = vmatpush1.msra.mxu1 %v78_v6  ;;  %v249_v21 = vrot.slane %v1851_v18, %v248_v17  ;;  %v267_v22 = vrot.slane %v1851_v18, %v266_v19  ;;  %v373_v23 = vrot.slane %v1851_v18, %v372_v20  ;;  %v1914_v53 = vld [vmem:[#allocation7 + $0x8] sm:$0xff] }
  0x2c   :  { %124 = vmatprep.subr.mxu1 %v76_v7  ;;  %v255_v32 = vrot.slane %v1851_v18, %v254_v26  ;;  %v261_v33 = vrot.slane %v1851_v18, %v260_v27  ;;  %v1901_v46 = vrot.slane %v1851_v18, %v639_v41 }
  0x2d   :  { %125 = vmatpush1.msra.mxu1 %v75_v8 }
  0x2e   :  { %1389 = vmatmul.mubr.msk.f32.vlgmr.msra.gmra.mxu1 %vm87_vm0, %v1821_v9  ;;  %1473 = vmatprep.subr.mxu1 %v86_v10 }
  0x2f   :  { %164 = vmatprep.mubr.f32.mxu1 %v1735_v0  ;;  %1474 = vmatpush3.msra.mxu1 %v86_v10 }
  0x30   :  { %1475 = vmatprep.subr.mxu1 %v83_v11 }
  0x31   :  { %1476 = vmatpush3.msra.mxu1 %v83_v11 }
  0x32   :  { %1390 = vmatmul.mubr.msk.f32.gmra.mxu1 %vm87_vm0, %v1831_v12  ;;  %1477 = vmatprep.subr.mxu1 %v80_v13 }
  0x33   :  { %1478 = vmatpush3.msra.mxu1 %v80_v13  ;;  %1481 = vmatprep.mubr.msk.f32.mxu1 %vm87_vm0, %v1821_v9 }
  0x34   :  { %1479 = vmatprep.subr.mxu1 %v77_v14 }
  0x35   :  { %1480 = vmatpush3.msra.mxu1 %v77_v14 }
  0x36   :  { %1482 = vmatmul.mubr.msk.f32.vlgmr.msra.gmra.mxu1 %vm87_vm0, %v1831_v12 }
  0xee   :  { %v160_v24 = vpop.f32.mrf.mxu1 }
  0xef   :  { %v1864_v25 = vadd.f32 %v249_v21, %v160_v24  ;;  %v827_v24 = vsub.s32 6, %v1845_v16 }
  0xf0   :  { %v162_v28 = vpop.f32.mrf.mxu1 }
  0xf1   :  { %v268_v29 = vmul.f32 %v267_v22, %v1864_v25  ;;  %v374_v30 = vmul.f32 %v373_v23, %v1864_v25  ;;  %v1878_v37 = vadd.f32 %v255_v32, %v162_v28  ;;  %v641_v28 = vmul.f32 %v1901_v46, %v1864_v25 }
  0xf2   :  { %v166_v31 = vpop.f32.mrf.mxu1 }
  0xf3   :  { %1488 = vmatprep.mubr.f32.mxu0 %v268_v29  ;;  %1495 = vmatprep.mubr.f32.mxu1 %v374_v30  ;;  %v1884_v39 = vadd.f32 %v249_v21, %v166_v31  ;;  %v1936_v29 = vrot.slane %v1851_v18, %v827_v24 }
  0xf4   :  { %v168_v34 = vpop.f32.mrf.mxu1 }
  0xf5   :  { %v1876_v35 = vadd.f32 %v255_v32, %v168_v34  ;;  %v269_v45 = vmul.f32 %v267_v22, %v1884_v39  ;;  %v375_v47 = vmul.f32 %v373_v23, %v1884_v39  ;;  %v642_v31 = vmul.f32 %v1901_v46, %v1884_v39 }
  0xf6   :  { %v1483_v36 = vpop.f32.mrf.mxu1 }
  0xf7   :  { %1484 = vmatprep.subr.mxu0 %v1876_v35  ;;  %1491 = vmatprep.subr.mxu1 %v1876_v35  ;;  %v1882_v38 = vadd.f32 %v1483_v36, %v261_v33 }
  0xf8   :  { %1485 = vmatpush3.xpose.msra.mxu0 %v1876_v35  ;;  %1492 = vmatpush3.xpose.msra.mxu1 %v1876_v35  ;;  %v237_v40 = vpop.f32.mrf.mxu1 }
  0xf9   :  { %1486 = vmatprep.subr.mxu0 %v1878_v37  ;;  %1493 = vmatprep.subr.mxu1 %v1878_v37  ;;  %v1891_v42 = vadd.f32 %v261_v33, %v237_v40  ;;  %v474_v43 = vmul.f32 %v373_v23, %v1882_v38  ;;  %v369_v44 = vmul.f32 %v267_v22, %v1882_v38 }
  0xfa   :  { %v1908_v50 = vmul.f32 %v1901_v46, %v1882_v38  ;;  %v929_v30 = vmul.f32 %v1936_v29, %v1882_v38 }
  0xfb   :  { %v473_v48 = vmul.f32 %v373_v23, %v1891_v42  ;;  %v368_v49 = vmul.f32 %v267_v22, %v1891_v42  ;;  %v928_v32 = vmul.f32 %v1936_v29, %v1891_v42 }
  0xfc   :  { %1487 = vmatpush3.xpose.msra.mxu0 %v1878_v37  ;;  %1494 = vmatpush3.xpose.msra.mxu1 %v1878_v37 }
  0xfd   :  { %1498 = vmatprep.subr.mxu0 %v474_v43  ;;  %1505 = vmatprep.subr.mxu1 %v369_v44 }
  0xff   :  { %1489 = vmatmul.mubr.f32.vlgmr.msra.gmra.mxu0 %v269_v45  ;;  %1496 = vmatmul.mubr.f32.vlgmr.msra.gmra.mxu1 %v375_v47 }
 0x100   :  { %1499 = vmatpush3.msra.mxu0 %v474_v43  ;;  %1506 = vmatpush3.msra.mxu1 %v369_v44 }
 0x101   :  { %1500 = vmatprep.subr.mxu0 %v473_v48  ;;  %1507 = vmatprep.subr.mxu1 %v368_v49 }
 0x102   :  { %1501 = vmatpush3.msra.mxu0 %v473_v48  ;;  %1508 = vmatpush3.msra.mxu1 %v368_v49 }
 0x103   :  { %1512 = vmatprep.subr.mxu0 %v1876_v35  ;;  %1519 = vmatprep.subr.mxu1 %v1908_v50 }
 0x1bf   :  { %v1497_v51 = vpop.f32.mrf.mxu1  ;;  %v1490_v54 = vpop.f32.mrf.mxu0 }
 0x1c0   :  { %v448_v57 = vadd.f32 %v1497_v51, %v1914_v53  ;;  %v342_v8 = vadd.f32 %v1490_v54, %v1914_v53 }
 0x1c1   :  { %v442_v55 = vpop.f32.mrf.mxu1  ;;  %v336_v59 = vpop.f32.mrf.mxu0 }
 0x1c2   :  { %v443_v56 = vadd.f32 %v442_v55, %v1912_v52  ;;  %v337_v60 = vadd.f32 %v336_v59, %v1912_v52  ;;  %v454_v61 = vsel %vm345_vm1, %v448_v57, -inf  ;;  %v349_v11 = vsel %vm345_vm1, %v342_v8, -inf }
 0x1c4   :  { %v451_v58 = vsel %vm345_vm1, %v443_v56, -inf  ;;  %v346_v62 = vsel %vm345_vm1, %v337_v60, -inf }
 0x1c5   :  { %452 = vmax.xlane.f32.xlu0 %v451_v58 }
 0x1c9   :  { %455 = vmax.xlane.f32.xlu0 %v454_v61 }
 0x1cd   :  { %347 = vmax.xlane.f32.xlu0 %v346_v62 }
 0x24e   :  { %v453_v63 = vpop.xlane.xlu0 %452 }
 0x24f   :  { %v457_v0 = vsub.f32 %v443_v56, %v453_v63 }
 0x251   :  { %v459_v1 = vmul.f32 1.442695, %v457_v0 }
 0x252   :  { %v456_v2 = vpop.xlane.xlu0 %455 }
 0x253   :  { %1604 = vpow2.f32 %v459_v1  ;;  %v458_v3 = vsub.f32 %v448_v57, %v456_v2 }
 0x255   :  { %v461_v4 = vmul.f32 1.442695, %v458_v3 }
 0x256   :  { %v348_v34 = vpop.xlane.xlu0 %347 }
 0x257   :  { %1606 = vpow2.f32 %v461_v4  ;;  %v352_v36 = vsub.f32 %v337_v60, %v348_v34 }
 0x259   :  { %v354_v43 = vmul.f32 1.442695, %v352_v36 }
 0x260   :  { %v1605_v5 = vpop.eup %1604 }
 0x261   :  { %v463_v6 = vsel %vm345_vm1, %v1605_v5, 0.0 }
 0x262   :  { %464 = vadd.xlane.f32.xlu1 %v463_v6 }
 0x264   :  { %v1607_v7 = vpop.eup %1606 }
 0x265   :  { %v466_v10 = vsel %vm345_vm1, %v1607_v7, 0.0 }
 0x266   :  { %467 = vadd.xlane.f32.xlu1 %v466_v10 }
 0x26a   :  { %350 = vmax.xlane.f32.xlu1 %v349_v11 }
 0x2eb   :  { %v465_v13 = vpop.xlane.xlu1 %464 }
 0x2ec   :  { %1608 = vrcp.f32 %v465_v13  ;;  %v740_v13 = vmul.f32 %v1901_v46, %v1891_v42  ;;  %v830_v42 = vmul.f32 %v1936_v29, %v1884_v39 }
 0x2ef   :  { %v468_v14 = vpop.xlane.xlu1 %467 }
 0x2f0   :  { %1610 = vrcp.f32 %v468_v14 }
 0x2f3   :  { %v351_v33 = vpop.xlane.xlu1 %350 }
 0x2f4   :  { %v353_v18 = vsub.f32 %v342_v8, %v351_v33 }
 0x2f6   :  { %v356_v40 = vmul.f32 1.442695, %v353_v18 }
 0x2f8   :  { %1612 = vpow2.f32 %v356_v40 }
 0x2f9   :  { %v1609_v15 = vpop.eup %1608  ;;  %1614 = vpow2.f32 %v354_v43 }
 0x2fa   :  { %v470_v21 = vmul.f32 %v1609_v15, %v1605_v5 }
 0x2fc   :  { %1502 = vmatprep.mubr.msk.f32.mxu0 %vm345_vm1, %v470_v21 }
 0x2fd   :  { %v1611_v22 = vpop.eup %1610 }
 0x2fe   :  { %v472_v23 = vmul.f32 %v1611_v22, %v1607_v7 }
 0x300   :  { %1503 = vmatmul.mubr.msk.f32.vlgmr.msra.gmra.mxu0 %vm345_vm1, %v472_v23 }
 0x301   :  { %1513 = vmatpush3.xpose.msra.mxu0 %v1876_v35  ;;  %1516 = vmatprep.mubr.f32.mxu0 %v641_v28 }
 0x302   :  { %1514 = vmatprep.subr.mxu0 %v1878_v37 }
 0x305   :  { %1515 = vmatpush3.xpose.msra.mxu0 %v1878_v37  ;;  %v1613_v54 = vpop.eup %1612 }
 0x306   :  { %1533 = vmatprep.subr.mxu0 %v929_v30  ;;  %v1615_v56 = vpop.eup %1614  ;;  %v361_v57 = vsel %vm345_vm1, %v1613_v54, 0.0 }
 0x307   :  { %v358_v58 = vsel %vm345_vm1, %v1615_v56, 0.0 }
 0x308   :  { %1517 = vmatmul.mubr.f32.vlgmr.msra.gmra.mxu0 %v642_v31 }
 0x309   :  { %1534 = vmatpush3.msra.mxu0 %v929_v30  ;;  %v829_v30 = vmul.f32 %v1936_v29, %v1864_v25 }
 0x30a   :  { %1535 = vmatprep.subr.mxu0 %v928_v32 }
 0x30b   :  { %1536 = vmatpush3.msra.mxu0 %v928_v32 }
 0x3c0   :  { %v1945_v38 = vpop.f32.mrf.mxu0 }
 0x3c2   :  { %v1947_v44 = vpop.f32.mrf.mxu0 }
 0x3c8   :  { %v1518_v45 = vpop.f32.mrf.mxu0 }
 0x3c9   :  { %v715_v47 = vadd.f32 %v1518_v45, %v1914_v53 }
 0x3ca   :  { %v709_v48 = vpop.f32.mrf.mxu0 }
 0x3cb   :  { %v710_v49 = vadd.f32 %v709_v48, %v1912_v52  ;;  %v721_v51 = vsel %vm345_vm1, %v715_v47, -inf }
 0x3cc   :  { %722 = vmax.xlane.f32.xlu1 %v721_v51  ;;  %v1028_v51 = vld [vmem:[%s2112_s2 + $0x78] sm:$0xff] }
 0x3cd   :  { %v718_v55 = vsel %vm345_vm1, %v710_v49, -inf  ;;  %1540 = vmatprep.subr.mxu0 %v1028_v51 }
 0x3ce   :  { %719 = vmax.xlane.f32.xlu0 %v718_v55 }
 0x3d0   :  { %362 = vadd.xlane.f32.xlu1 %v361_v57 }
 0x3d2   :  { %359 = vadd.xlane.f32.xlu0 %v358_v58 }
 0x455   :  { %v723_v59 = vpop.xlane.xlu1 %722 }
 0x456   :  { %v725_v60 = vsub.f32 %v715_v47, %v723_v59 }
 0x457   :  { %v720_v61 = vpop.xlane.xlu0 %719 }
 0x458   :  { %v728_v62 = vmul.f32 1.442695, %v725_v60  ;;  %v724_v63 = vsub.f32 %v710_v49, %v720_v61  ;;  %v1027_v60 = vld [vmem:[%s2112_s2 + $0x70] sm:$0xff]  ;;  %v1026_v61 = vld [vmem:[%s2112_s2 + $0x68] sm:$0xff] }
 0x459   :  { %v363_v0 = vpop.xlane.xlu1 %362 }
 0x45a   :  { %1616 = vpow2.f32 %v728_v62  ;;  %v726_v1 = vmul.f32 1.442695, %v724_v63  ;;  %v1025_v62 = vld [vmem:[%s2112_s2 + $0x60] sm:$0xff]  ;;  %v1024_v63 = vld [vmem:[%s2112_s2 + $0x58] sm:$0xff] }
 0x45b   :  { %1618 = vrcp.f32 %v363_v0  ;;  %v360_v2 = vpop.xlane.xlu0 %359  ;;  %v1023_v0 = vld [vmem:[%s2112_s2 + $0x50] sm:$0xff] }
 0x45c   :  { %1620 = vpow2.f32 %v726_v1  ;;  %v1022_v1 = vld [vmem:[%s2112_s2 + $0x48] sm:$0xff] }
 0x45d   :  { %1622 = vrcp.f32 %v360_v2  ;;  %v1021_v2 = vld [vmem:[%s2112_s2 + $0x40] sm:$0xff] }
 0x467   :  { %v1617_v3 = vpop.eup %1616 }
 0x468   :  { %v1619_v4 = vpop.eup %1618  ;;  %v733_v5 = vsel %vm345_vm1, %v1617_v3, 0.0 }
 0x469   :  { %v1621_v6 = vpop.eup %1620  ;;  %734 = vadd.xlane.f32.xlu1 %v733_v5  ;;  %v367_v11 = vmul.f32 %v1619_v4, %v1613_v54  ;;  %v1019_v4 = vld [vmem:[%s2112_s2 + $0x30] sm:$0xff]  ;;  %v1018_v5 = vld [vmem:[%s2112_s2 + $0x28] sm:$0xff] }
 0x46a   :  { %v1623_v7 = vpop.eup %1622  ;;  %v730_v8 = vsel %vm345_vm1, %v1621_v6, 0.0 }
 0x46b   :  { %731 = vadd.xlane.f32.xlu0 %v730_v8  ;;  %v365_v10 = vmul.f32 %v1623_v7, %v1615_v56  ;;  %v1016_v7 = vld [vmem:[%s2112_s2 + $0x18] sm:$0xff]  ;;  %v1015_v8 = vld [vmem:[%s2112_s2 + $0x10] sm:$0xff] }
 0x46d   :  { %1509 = vmatprep.mubr.msk.f32.mxu1 %vm345_vm1, %v365_v10  ;;  %v1014_v10 = vld [vmem:[%s2112_s2 + $0x8] sm:$0xff] }
 0x46e   :  { %1510 = vmatmul.mubr.msk.f32.vlgmr.msra.gmra.mxu1 %vm345_vm1, %v367_v11  ;;  %v1013_v11 = vld [vmem:[%s2112_s2] sm:$0xff] }
 0x46f   :  { %1520 = vmatpush3.msra.mxu1 %v1908_v50 }
 0x470   :  { %1521 = vmatprep.subr.mxu1 %v740_v13 }
 0x471   :  { %1522 = vmatpush3.msra.mxu1 %v740_v13 }
 0x472   :  { %1526 = vmatprep.subr.mxu1 %v1876_v35 }
 0x4f2   :  { %v735_v14 = vpop.xlane.xlu1 %734 }
 0x4f3   :  { %1624 = vrcp.f32 %v735_v14 }
 0x4f4   :  { %v732_v15 = vpop.xlane.xlu0 %731 }
 0x4f5   :  { %1626 = vrcp.f32 %v732_v15 }
 0x500   :  { %v1625_v21 = vpop.eup %1624 }
 0x501   :  { %v739_v28 = vmul.f32 %v1625_v21, %v1617_v3  ;;  %v1020_v3 = vld [vmem:[%s2112_s2 + $0x38] sm:$0xff] }
 0x502   :  { %v1627_v22 = vpop.eup %1626 }
 0x503   :  { %v737_v23 = vmul.f32 %v1627_v22, %v1621_v6  ;;  %v1017_v6 = vld [vmem:[%s2112_s2 + $0x20] sm:$0xff] }
 0x505   :  { %1523 = vmatprep.mubr.msk.f32.mxu1 %vm345_vm1, %v737_v23 }
 0x506   :  { %1524 = vmatmul.mubr.msk.f32.vlgmr.msra.gmra.mxu1 %vm345_vm1, %v739_v28  ;;  %v2039_v28 = vld [vmem:[#allocation5] sm:$0xff] }
 0x507   :  { %1527 = vmatpush3.xpose.msra.mxu1 %v1876_v35  ;;  %1530 = vmatprep.mubr.f32.mxu1 %v829_v30  ;;  %v1032_v30 = vrot.slane %v2039_v28, %v248_v17 }
 0x508   :  { %1528 = vmatprep.subr.mxu1 %v1878_v37 }
 0x50b   :  { %1529 = vmatpush3.xpose.msra.mxu1 %v1878_v37 }
 0x50e   :  { %1531 = vmatmul.mubr.f32.vlgmr.msra.gmra.mxu1 %v830_v42 }
 0x52e   :  { %v1511_v46 = vpop.f32.mrf.mxu1 }
 0x52f   :  { %v634_v31 = vadd.f32 %v1511_v46, %v1945_v38 }
 0x530   :  { %v1972_v50 = vpop.f32.mrf.mxu1 }
 0x531   :  { %v629_v13 = vadd.f32 %v1972_v50, %v1947_v44 }
 0x5c6   :  { %v1525_v32 = vpop.f32.mrf.mxu1 }
 0x5c7   :  { %v1975_v25 = vadd.f32 %v1525_v32, %v634_v31 }
 0x5c8   :  { %v1977_v33 = vpop.f32.mrf.mxu1 }
 0x5c9   :  { %v823_v15 = vadd.f32 %v1977_v33, %v629_v13  ;;  %v1247_v13 = vrot.slane %v2039_v28, %v372_v20 }
 0x5ce   :  { %v1532_v35 = vpop.f32.mrf.mxu1 }
 0x5cf   :  { %v903_v34 = vadd.f32 %v1532_v35, %v1914_v53 }
 0x5d0   :  { %v897_v18 = vpop.f32.mrf.mxu1 }
 0x5d1   :  { %v898_v37 = vadd.f32 %v897_v18, %v1912_v52  ;;  %v909_v36 = vsel %vm345_vm1, %v903_v34, -inf }
 0x5d2   :  { %910 = vmax.xlane.f32.xlu1 %v909_v36 }
 0x5d3   :  { %v906_v39 = vsel %vm345_vm1, %v898_v37, -inf }
 0x5d4   :  { %907 = vmax.xlane.f32.xlu0 %v906_v39 }
 0x65b   :  { %v911_v29 = vpop.xlane.xlu1 %910 }
 0x65c   :  { %v913_v40 = vsub.f32 %v903_v34, %v911_v29 }
 0x65d   :  { %v908_v43 = vpop.xlane.xlu0 %907 }
 0x65e   :  { %v916_v38 = vmul.f32 1.442695, %v913_v40  ;;  %v912_v45 = vsub.f32 %v898_v37, %v908_v43 }
 0x660   :  { %1628 = vpow2.f32 %v916_v38  ;;  %v914_v47 = vmul.f32 1.442695, %v912_v45  ;;  %v1152_v38 = vld [vmem:[%s2113_s3 + $0x18] sm:$0xff]  ;;  %v1151_v45 = vld [vmem:[%s2113_s3 + $0x10] sm:$0xff] }
 0x661   :  { %1575 = vmatprep.subr.mxu1 %v1152_v38 }
 0x662   :  { %1630 = vpow2.f32 %v914_v47  ;;  %1576 = vmatpush3.msra.mxu1 %v1152_v38  ;;  %v1150_v47 = vld [vmem:[%s2113_s3 + $0x8] sm:$0xff] }
 0x663   :  { %1577 = vmatprep.subr.mxu1 %v1151_v45 }
 0x664   :  { %1578 = vmatpush3.msra.mxu1 %v1151_v45 }
 0x665   :  { %1579 = vmatprep.subr.mxu1 %v1150_v47 }
 0x666   :  { %1580 = vmatpush3.msra.mxu1 %v1150_v47 }
 0x66d   :  { %v1629_v48 = vpop.eup %1628 }
 0x66e   :  { %v921_v53 = vsel %vm345_vm1, %v1629_v48, 0.0 }
 0x66f   :  { %v1631_v49 = vpop.eup %1630  ;;  %922 = vadd.xlane.f32.xlu1 %v921_v53 }
 0x670   :  { %v918_v52 = vsel %vm345_vm1, %v1631_v49, 0.0 }
 0x671   :  { %919 = vadd.xlane.f32.xlu0 %v918_v52 }
 0x6f8   :  { %v923_v54 = vpop.xlane.xlu1 %922 }
 0x6f9   :  { %1632 = vrcp.f32 %v923_v54 }
 0x6fa   :  { %v920_v55 = vpop.xlane.xlu0 %919 }
 0x6fb   :  { %1634 = vrcp.f32 %v920_v55 }
 0x706   :  { %v1633_v56 = vpop.eup %1632 }
 0x707   :  { %v927_v59 = vmul.f32 %v1633_v56, %v1629_v48  ;;  %v1149_v48 = vld [vmem:[%s2113_s3] sm:$0xff]  ;;  %v1140_v56 = vrot.slane %v2039_v28, %v254_v26  ;;  %v1243_v26 = vld [vmem:[%s2114_s4 + $0x18] sm:$0xff] }
 0x708   :  { %v1635_v57 = vpop.eup %1634  ;;  %1581 = vmatprep.subr.mxu1 %v1149_v48 }
 0x709   :  { %v925_v58 = vmul.f32 %v1635_v57, %v1631_v49  ;;  %1582 = vmatpush3.msra.mxu1 %v1149_v48 }
 0x70a   :  { %1586 = vmatprep.subr.mxu1 %v1243_v26 }
 0x70b   :  { %1537 = vmatprep.mubr.msk.f32.mxu0 %vm345_vm1, %v925_v58  ;;  %v1146_v58 = vrot.slane %v2039_v28, %v260_v27  ;;  %v1242_v27 = vld [vmem:[%s2114_s4 + $0x10] sm:$0xff] }
 0x70c   :  { %1538 = vmatmul.mubr.msk.f32.vlgmr.msra.gmra.mxu0 %vm345_vm1, %v927_v59 }
 0x70d   :  { %1541 = vmatpush3.msra.mxu0 %v1028_v51 }
 0x70e   :  { %1542 = vmatprep.subr.mxu0 %v1027_v60 }
 0x70f   :  { %1543 = vmatpush3.msra.mxu0 %v1027_v60 }
 0x710   :  { %1544 = vmatprep.subr.mxu0 %v1026_v61 }
 0x711   :  { %1545 = vmatpush3.msra.mxu0 %v1026_v61 }
 0x712   :  { %1546 = vmatprep.subr.mxu0 %v1025_v62 }
 0x713   :  { %1547 = vmatpush3.msra.mxu0 %v1025_v62 }
 0x714   :  { %1548 = vmatprep.subr.mxu0 %v1024_v63 }
 0x715   :  { %1549 = vmatpush3.msra.mxu0 %v1024_v63 }
 0x716   :  { %1550 = vmatprep.subr.mxu0 %v1023_v0 }
 0x717   :  { %1551 = vmatpush3.msra.mxu0 %v1023_v0 }
 0x718   :  { %1552 = vmatprep.subr.mxu0 %v1022_v1 }
 0x719   :  { %1553 = vmatpush3.msra.mxu0 %v1022_v1 }
 0x71a   :  { %1554 = vmatprep.subr.mxu0 %v1021_v2 }
 0x71b   :  { %1555 = vmatpush3.msra.mxu0 %v1021_v2  ;;  %v1241_v2 = vld [vmem:[%s2114_s4 + $0x8] sm:$0xff] }
 0x71c   :  { %1556 = vmatprep.subr.mxu0 %v1020_v3 }
 0x71d   :  { %1557 = vmatpush3.msra.mxu0 %v1020_v3  ;;  %v1240_v3 = vld [vmem:[%s2114_s4] sm:$0xff]  ;;  %s1736_s4 = smov [#allocation8]  }
 0x71e   :  { %1558 = vmatprep.subr.mxu0 %v1019_v4  ;;  %s1376_s20 = sshll.u32 %s1736_s4, 4  ;;  %s1377_s20 = int_to_ptr.vmem [resolvable:$true] %s1376_s20 }
 0x71f   :  { %1559 = vmatpush3.msra.mxu0 %v1019_v4  ;;  %v1156_v4 = vrot.slane %v2039_v28, %v266_v19  ;;  %s1704_s0 = scalar_lea.vmem %s1377_s20, 256  ;;  %p1709_p2 = scmp.lt.s32.totalorder %s1377_s20, %s1377_s20 }
 0x720   :  { %1560 = vmatprep.subr.mxu0 %v1018_v5  ;;  %p1705_p1 = scmp.ne.s32.totalorder %s1377_s20, %s1704_s0  ;;  %p1710_p3 = scmp.lt.s32.totalorder %s1704_s0, %s1704_s0 }
 0x721   :  { %1561 = vmatpush3.msra.mxu0 %v1018_v5 }
 0x722   :  { %1562 = vmatprep.subr.mxu0 %v1017_v6  ;;  %p1711_p4 = por %p1710_p3, %p1709_p2 }
 0x723   :  { %1563 = vmatpush3.msra.mxu0 %v1017_v6 }
 0x724   :  { %1564 = vmatprep.subr.mxu0 %v1016_v7  ;;  %p1712_p5 = pnand %p1711_p4, %p1705_p1 }
 0x725   :  { %1565 = vmatpush3.msra.mxu0 %v1016_v7 }
 0x726   :  { %1566 = vmatprep.subr.mxu0 %v1015_v8 }
 0x727   :  { %1567 = vmatpush3.msra.mxu0 %v1015_v8 }
 0x728   :  { %1568 = vmatprep.subr.mxu0 %v1014_v10 }
 0x729   :  { %1569 = vmatpush3.msra.mxu0 %v1014_v10 }
 0x72a   :  { %1570 = vmatprep.subr.mxu0 %v1013_v11 }
 0x72b   :  { %1571 = vmatpush3.msra.mxu0 %v1013_v11 }
 0x7cc   :  { %v1539_v14 = vpop.f32.mrf.mxu0 }
 0x7cd   :  { %v1012_v23 = vadd.f32 %v1539_v14, %v1975_v25 }
 0x7ce   :  { %v1002_v21 = vpop.f32.mrf.mxu0 }
 0x7cf   :  { %v1011_v22 = vadd.f32 %v1002_v21, %v823_v15 }
 0x7d1   :  { %1572 = vmatprep.mubr.f32.mxu0 %v1011_v22 }
 0x7d2   :  { %1573 = vmatmul.mubr.f32.vlgmr.msra.gmra.mxu0 %v1012_v23 }
 0x892   :  { %v1574_v42 = vpop.f32.mrf.mxu0 }
 0x893   :  { %v1105_v46 = vadd.f32 %v1574_v42, %v1032_v30 }
 0x894   :  { %v1099_v31 = vpop.f32.mrf.mxu0 }
 0x895   :  { %v1100_v32 = vadd.f32 %v1099_v31, %v1032_v30  ;;  %v1109_v44 = vadd.f32 %v1105_v46, %v1831_v12 }
 0x897   :  { %v1113_v50 = vsel %vm87_vm0, %v1109_v44, 0.0  ;;  %v1108_v33 = vadd.f32 %v1100_v32, %v1821_v9 }
 0x898   :  { %1114 = vadd.xlane.f32.xlu1 %v1113_v50 }
 0x899   :  { %v1110_v25 = vsel %vm87_vm0, %v1108_v33, 0.0 }
 0x89a   :  { %1111 = vadd.xlane.f32.xlu0 %v1110_v25 }
 0x921   :  { %v1115_v35 = vpop.xlane.xlu1 %1114 }
 0x922   :  { %v1118_v34 = vmul.f32 0.03125, %v1115_v35 }
 0x923   :  { %v1112_v18 = vpop.xlane.xlu0 %1111 }
 0x924   :  { %v1120_v37 = vsub.f32 %v1109_v44, %v1118_v34  ;;  %v1117_v36 = vmul.f32 0.03125, %v1112_v18 }
 0x926   :  { %v1119_v17 = vsub.f32 %v1108_v33, %v1117_v36  ;;  %v1122_v39 = vmul.f32 %v1120_v37, %v1120_v37 }
 0x928   :  { %v1126_v29 = vsel %vm87_vm0, %v1122_v39, 0.0  ;;  %v1121_v40 = vmul.f32 %v1119_v17, %v1119_v17  ;;  %v1360_v39 = vrot.slane %v2039_v28, %v639_v41 }
 0x929   :  { %1127 = vadd.xlane.f32.xlu1 %v1126_v29 }
 0x92a   :  { %v1123_v43 = vsel %vm87_vm0, %v1121_v40, 0.0 }
 0x92b   :  { %1124 = vadd.xlane.f32.xlu0 %v1123_v43  ;;  %v1366_v43 = vrot.slane %v2039_v28, %v827_v24 }
 0x9b2   :  { %v1128_v53 = vpop.xlane.xlu1 %1127 }
 0x9b3   :  { %v1130_v49 = vmul.f32 0.03125, %v1128_v53 }
 0x9b4   :  { %v1125_v52 = vpop.xlane.xlu0 %1124 }
 0x9b5   :  { %v1132_v51 = vadd.f32 1e-05, %v1130_v49  ;;  %v1129_v54 = vmul.f32 0.03125, %v1125_v52 }
 0x9b7   :  { %1636 = vrsqrt.f32 %v1132_v51  ;;  %v1131_v55 = vadd.f32 1e-05, %v1129_v54 }
 0x9b9   :  { %1638 = vrsqrt.f32 %v1131_v55 }
 0x9c4   :  { %v1637_v57 = vpop.eup %1636 }
 0x9c5   :  { %v1136_v59 = vmul.f32 %v1637_v57, %v1120_v37 }
 0x9c6   :  { %v1639_v60 = vpop.eup %1638 }
 0x9c7   :  { %v1135_v61 = vmul.f32 %v1639_v60, %v1119_v17  ;;  %v1142_v62 = vmul.f32 %v1140_v56, %v1136_v59 }
 0x9c9   :  { %v1141_v63 = vmul.f32 %v1140_v56, %v1135_v61  ;;  %v1148_v0 = vadd.f32 %v1146_v58, %v1142_v62 }
 0x9cb   :  { %v1147_v1 = vadd.f32 %v1146_v58, %v1141_v63 }
 0x9cd   :  { %1583 = vmatprep.mubr.msk.f32.mxu1 %vm87_vm0, %v1147_v1 }
 0x9ce   :  { %1584 = vmatmul.mubr.msk.f32.vlgmr.msra.gmra.mxu1 %vm87_vm0, %v1148_v0 }
 0x9cf   :  { %1587 = vmatpush3.msra.mxu1 %v1243_v26 }
 0x9d0   :  { %1588 = vmatprep.subr.mxu1 %v1242_v27 }
 0x9d1   :  { %1589 = vmatpush3.msra.mxu1 %v1242_v27 }
 0x9d2   :  { %1590 = vmatprep.subr.mxu1 %v1241_v2 }
 0x9d3   :  { %1591 = vmatpush3.msra.mxu1 %v1241_v2 }
 0x9d4   :  { %1592 = vmatprep.subr.mxu1 %v1240_v3 }
 0x9d5   :  { %1593 = vmatpush3.msra.mxu1 %v1240_v3 }
 0xa8e   :  { %v1585_v5 = vpop.f32.mrf.mxu1 }
 0xa8f   :  { %v1235_v6 = vadd.f32 %v1585_v5, %v1156_v4 }
 0xa90   :  { %v1229_v7 = vpop.f32.mrf.mxu1 }
 0xa91   :  { %v1230_v8 = vadd.f32 %v1229_v7, %v1156_v4  ;;  %v1239_v11 = vmax.f32 %v1235_v6, 0.0 }
 0xa93   :  { %v1238_v10 = vmax.f32 %v1230_v8, 0.0 }
 0xa95   :  { %1594 = vmatprep.mubr.msk.f32.mxu1 %vm87_vm0, %v1238_v10 }
 0xa96   :  { %1595 = vmatmul.mubr.msk.f32.vlgmr.msra.gmra.mxu1 %vm87_vm0, %v1239_v11 }
 0xb56   :  { %v1596_v14 = vpop.f32.mrf.mxu1 }
 0xb57   :  { %v1326_v15 = vadd.f32 %v1596_v14, %v1247_v13 }
 0xb58   :  { %v1320_v21 = vpop.f32.mrf.mxu1 }
 0xb59   :  { %v1321_v22 = vadd.f32 %v1320_v21, %v1247_v13  ;;  %v1330_v19 = vadd.f32 %v1326_v15, %v1831_v12 }
 0xb5b   :  { %v1334_v23 = vsel %vm87_vm0, %v1330_v19, 0.0  ;;  %v1329_v30 = vadd.f32 %v1321_v22, %v1821_v9 }
 0xb5c   :  { %1335 = vadd.xlane.f32.xlu1 %v1334_v23 }
 0xb5d   :  { %v1331_v42 = vsel %vm87_vm0, %v1329_v30, 0.0 }
 0xb5e   :  { %1332 = vadd.xlane.f32.xlu0 %v1331_v42 }
 0xbe5   :  { %v1336_v46 = vpop.xlane.xlu1 %1335 }
 0xbe6   :  { %v1338_v31 = vmul.f32 0.03125, %v1336_v46 }
 0xbe7   :  { %v1333_v32 = vpop.xlane.xlu0 %1332 }
 0xbe8   :  { %v1340_v44 = vsub.f32 %v1330_v19, %v1338_v31  ;;  %v1337_v50 = vmul.f32 0.03125, %v1333_v32 }
 0xbea   :  { %v1339_v20 = vsub.f32 %v1329_v30, %v1337_v50  ;;  %v1342_v33 = vmul.f32 %v1340_v44, %v1340_v44 }
 0xbec   :  { %v1346_v25 = vsel %vm87_vm0, %v1342_v33, 0.0  ;;  %v1341_v35 = vmul.f32 %v1339_v20, %v1339_v20 }
 0xbed   :  { %1347 = vadd.xlane.f32.xlu1 %v1346_v25 }
 0xbee   :  { %v1343_v12 = vsel %vm87_vm0, %v1341_v35, 0.0 }
 0xbef   :  { %1344 = vadd.xlane.f32.xlu0 %v1343_v12 }
 0xc76   :  { %v1348_v34 = vpop.xlane.xlu1 %1347 }
 0xc77   :  { %v1350_v9 = vmul.f32 0.03125, %v1348_v34 }
 0xc78   :  { %v1345_v18 = vpop.xlane.xlu0 %1344 }
 0xc79   :  { %v1352_v37 = vadd.f32 1e-05, %v1350_v9  ;;  %v1349_v36 = vmul.f32 0.03125, %v1345_v18 }
 0xc7b   :  { %1640 = vrsqrt.f32 %v1352_v37  ;;  %v1351_v17 = vadd.f32 1e-05, %v1349_v36 }
 0xc7d   :  { %1642 = vrsqrt.f32 %v1351_v17 }
 0xc88   :  { %v1641_v29 = vpop.eup %1640 }
 0xc89   :  { %v1356_v40 = vmul.f32 %v1641_v29, %v1340_v44 }
 0xc8a   :  { %v1643_v38 = vpop.eup %1642 }
 0xc8b   :  { %v1355_v45 = vmul.f32 %v1643_v38, %v1339_v20  ;;  %v1362_v47 = vmul.f32 %v1360_v39, %v1356_v40 }
 0xc8d   :  { %v1361_v48 = vmul.f32 %v1360_v39, %v1355_v45  ;;  %v1368_v53 = vadd.f32 %v1366_v43, %v1362_v47 }
 0xc8f   :  { %v1367_v49 = vadd.f32 %v1366_v43, %v1361_v48  ;;  %1370 = vst.msk [vmem:[#allocation8 + $0x8] sm:$0xff] %vm87_vm0, %v1368_v53 }
 0xc91   :  { %1369 = vst.msk [vmem:[#allocation8] sm:$0xff] %vm87_vm0, %v1367_v49 }
 0xc92   :  { %1715 = shalt.err (!%p1712_p5)
}
 0xc93   :  { %1382 = dma.vmem_to_hbm [thread:$0]  %s1377_s20, 256, %s2118_s8, [#allocation4], %s1732_s13, %s1732_s13, %s1733_s14  }
 0xc94   :  { %1728 = dma.done.wait [#allocation4], 256  }
 0xc95   :  { %1729 = vsyncadd [#allocation4], 4294967040 }
 0xc96   :  { %1386 = vsyncpa [#allocation3], 1 }
 0xc97   :  { %1387 = vsyncpa [#allocation6], 1 }
 0xc98   :  { %1388 = vsyncpa [#allocation4], 1 }

</bundles_post_ra>
